<compile_context>
chip_gen: v7x
topology: tpu7x:2x2x1
jax: 0.10.0
libtpu: 0.0.40
codegen_flags: <defaults>
</compile_context>

<pallas_src>
import functools

import jax
import jax.numpy as jnp
from jax.experimental import pallas as pl
from jax.experimental.pallas import tpu as pltpu

LANE = 128
SUBLANE = 8


def _round_up(n, m):
    return ((n + m - 1) // m) * m


def _pick_batch_tile(batch):
    """Rows per batch tile.

    * batch < 512: single tile (rounded to a sublane multiple).
    * batch >= 512: at least 2 tiles so both v7x TensorCores get work, tiles up
      to 2048 rows so per-grid-step overhead is amortized on v5e/v6e.
    """
    if batch < 512:
        return _round_up(batch, SUBLANE)
    return min(2048, _round_up(-(-batch // 2), 256))


def _mlp(x, w1, b1, w2, b2, w3, b3):
    """relu(x@W1+b1) -> relu(@W2+b2) -> @W3+b3.

    bf16 MXU operands, f32 accumulation; bias add + ReLU stay in f32 (v5e has
    no bf16 VALU); the bf16 cast is folded into the ReLU so only the bf16 copy
    of each activation stays live across the next matmul.
    """
    h1 = jnp.dot(x.astype(jnp.bfloat16), w1,
                 preferred_element_type=jnp.float32) + b1
    h1 = jnp.maximum(h1, 0.0).astype(jnp.bfloat16)
    h2 = jnp.dot(h1, w2, preferred_element_type=jnp.float32) + b2
    h2 = jnp.maximum(h2, 0.0).astype(jnp.bfloat16)
    return jnp.dot(h2, w3, preferred_element_type=jnp.float32) + b3


def mlp_kernel(x_ref, w1_ref, b1_ref, w2_ref, b2_ref, w3_ref, b3_ref, o_ref):
    out = _mlp(x_ref[...], w1_ref[...], b1_ref[...], w2_ref[...], b2_ref[...],
               w3_ref[...], b3_ref[...])
    o_ref[...] = out.astype(o_ref.dtype)     # lane-dense, bf16 store


def ddqn_kernel(s_ref, sn_ref, a_ref, r_ref, done_ref,
                w1_ref, b1_ref, w2_ref, b2_ref, w3_ref, b3_ref,
                tw1_ref, tb1_ref, tw2_ref, tb2_ref, tw3_ref, tb3_ref,
                qsa_ref, tgt_ref, *, out_dim, gamma):
    """Fused double-DQN forward math; writes only two (tb, 1) columns."""
    online = (w1_ref[...], b1_ref[...], w2_ref[...], b2_ref[...],
              w3_ref[...], b3_ref[...])
    target = (tw1_ref[...], tb1_ref[...], tw2_ref[...], tb2_ref[...],
              tw3_ref[...], tb3_ref[...])

    s, sn = s_ref[...], sn_ref[...]
    q_s = _mlp(s, *online)        # (tb, out_p)  Q_online(s, .)
    q_n_on = _mlp(sn, *online)    # Q_online(s', .)  (action selection)
    q_n_tg = _mlp(sn, *target)    # Q_target(s', .)  (action evaluation)

    tb_rows, out_p = q_s.shape
    lane = jax.lax.broadcasted_iota(jnp.int32, (tb_rows, out_p), 1)
    lane = lane.astype(jnp.float32)
    valid = lane < out_dim        # padded action lanes are exactly 0 -> mask

    # Q(s, a): one-hot gather along lanes (XLU reduce; no dynamic gather).
    a = a_ref[...].astype(jnp.float32)                      # (tb, 1)
    qsa_ref[...] = jnp.sum(jnp.where(lane == a, q_s, 0.0),
                           axis=-1, keepdims=True)

    # Double-DQN: a* = argmax_a Q_online(s', a) over REAL lanes only.
    q_sel = jnp.where(valid, q_n_on, -jnp.inf)
    m = jnp.max(q_sel, axis=-1, keepdims=True)
    a_star = jnp.min(jnp.where(q_sel == m, lane, float(out_p)),
                     axis=-1, keepdims=True)                 # lowest-index argmax
    q_next = jnp.sum(jnp.where(lane == a_star, q_n_tg, 0.0),
                     axis=-1, keepdims=True)

    tgt_ref[...] = r_ref[...] + gamma * (1.0 - done_ref[...]) * q_next


def pad_params(params):
    """Zero-pad hidden/output feature dims to 128 lanes; weights -> bf16.

    Padded columns of every W and b are exactly zero, so the first out_dim
    columns of the padded network output equal the unpadded network output.
    Keep the f32 `params` as the master copy for training parity.
    """
    w1, b1, w2, b2, w3, b3 = params
    hid, out = w1.shape[1], w3.shape[1]
    hid_p, out_p = _round_up(hid, LANE), _round_up(out, LANE)
    w1p = jnp.pad(w1, ((0, 0), (0, hid_p - hid))).astype(jnp.bfloat16)
    b1p = jnp.pad(b1, ((0, 0), (0, hid_p - hid)))
    w2p = jnp.pad(w2, ((0, hid_p - hid), (0, hid_p - hid))).astype(jnp.bfloat16)
    b2p = jnp.pad(b2, ((0, 0), (0, hid_p - hid)))
    w3p = jnp.pad(w3, ((0, hid_p - hid), (0, out_p - out))).astype(jnp.bfloat16)
    b3p = jnp.pad(b3, ((0, 0), (0, out_p - out)))
    return (w1p, b1p, w2p, b2p, w3p, b3p)


@functools.partial(jax.jit, static_argnames=("out_dtype",))
def net_forward_padded(x, padded_params, out_dtype=jnp.bfloat16):
    """Padded forward: returns (batch_p, out_p); real Q-values in [:, :out_dim].

    Padded lanes are exactly 0; padded rows (if batch was padded) are garbage.
    Consumers should index this directly (or use ddqn_fused_step) instead of a
    wrapper-side slice, which would add an extra XLA dispatch.
    """
    w1, b1, w2, b2, w3, b3 = padded_params
    batch, in_dim = x.shape
    hid_p, out_p = w1.shape[1], w3.shape[1]

    tb = _pick_batch_tile(batch)
    batch_p = _round_up(batch, tb)
    if batch_p != batch:
        x = jnp.pad(x, ((0, batch_p - batch), (0, 0)))
    num_tiles = batch_p // tb

    params = (w1, b1, w2, b2, w3, b3)
    grid_spec = pltpu.PrefetchScalarGridSpec(
        num_scalar_prefetch=0,
        grid=(num_tiles,),
        in_specs=[pl.BlockSpec((tb, in_dim), lambda i: (i, 0))] +    # activations stream
                 [pl.BlockSpec(p.shape, lambda i: (0, 0)) for p in params],  # weights stay put
        out_specs=pl.BlockSpec((tb, out_p), lambda i: (i, 0)),       # lane-dense bf16 store
    )

    param_bytes = sum(int(p.size) * p.dtype.itemsize for p in params)
    cost = pl.CostEstimate(
        flops=2 * batch_p * (in_dim * hid_p + hid_p * hid_p + hid_p * out_p),
        transcendentals=0,
        bytes_accessed=(batch_p * in_dim * 4 + param_bytes
                        + batch_p * out_p * jnp.dtype(out_dtype).itemsize),
    )

    return pl.pallas_call(
        mlp_kernel,
        out_shape=jax.ShapeDtypeStruct((batch_p, out_p), out_dtype),
        grid_spec=grid_spec,
        cost_estimate=cost,
        compiler_params=pltpu.CompilerParams(
            dimension_semantics=("parallel",)),   # shard batch tiles across TCs (v7x)
    )(x, *params)


def net_forward(x, padded_params, out_dim, out_dtype=jnp.bfloat16):
    """Module-exact API: (batch, out_dim). The trailing slice is an extra
    dispatch; hot loops should use net_forward_padded / ddqn_fused_step."""
    return net_forward_padded(x, padded_params, out_dtype)[: x.shape[0], :out_dim]


@functools.partial(jax.jit, static_argnames=("out_dim", "gamma"))
def ddqn_fused_step(s, s_next, actions, rewards, dones,
                    online_params_p, target_params_p, *, out_dim, gamma):
    """One pallas_call for a double-DQN step's forward math:
        q_sa   = Q_online(s)[., a]
        target = r + gamma*(1-done)*Q_target(s')[., argmax_a Q_online(s', a)]
    Only two (batch_p, 1) f32 columns are written back; no padded Q matrices,
    no separate XLA argmax / gather / slice kernels."""
    batch, in_dim = s.shape
    hid_p, out_p = online_params_p[0].shape[1], online_params_p[4].shape[1]

    tb = _pick_batch_tile(batch)
    batch_p = _round_up(batch, tb)

    a = actions.reshape(batch, 1).astype(jnp.int32)
    r = rewards.reshape(batch, 1).astype(jnp.float32)
    d = dones.reshape(batch, 1).astype(jnp.float32)
    if batch_p != batch:
        pad = ((0, batch_p - batch), (0, 0))
        s, s_next = jnp.pad(s, pad), jnp.pad(s_next, pad)
        a, r, d = jnp.pad(a, pad), jnp.pad(r, pad), jnp.pad(d, pad)
    num_tiles = batch_p // tb

    params = tuple(online_params_p) + tuple(target_params_p)

    def row_spec(width):
        return pl.BlockSpec((tb, width), lambda i: (i, 0))

    grid_spec = pltpu.PrefetchScalarGridSpec(
        num_scalar_prefetch=0,
        grid=(num_tiles,),
        in_specs=[row_spec(in_dim), row_spec(in_dim),
                  row_spec(1), row_spec(1), row_spec(1)] +
                 [pl.BlockSpec(p.shape, lambda i: (0, 0)) for p in params],
        out_specs=[row_spec(1), row_spec(1)],
    )

    param_bytes = sum(int(p.size) * p.dtype.itemsize for p in params)
    cost = pl.CostEstimate(
        flops=3 * 2 * batch_p * (in_dim * hid_p + hid_p * hid_p + hid_p * out_p),
        transcendentals=0,
        bytes_accessed=(2 * batch_p * in_dim * 4 + 3 * batch_p * 4
                        + param_bytes + 2 * batch_p * 4),
    )

    q_sa, target = pl.pallas_call(
        functools.partial(ddqn_kernel, out_dim=out_dim, gamma=gamma),
        out_shape=(jax.ShapeDtypeStruct((batch_p, 1), jnp.float32),
                   jax.ShapeDtypeStruct((batch_p, 1), jnp.float32)),
        grid_spec=grid_spec,
        cost_estimate=cost,
        compiler_params=pltpu.CompilerParams(
            dimension_semantics=("parallel",)),
    )(s, s_next, a, r, d, *params)
    return q_sa, target


def init_params(key, in_dim, hidden, out_dim):
    """Deterministic init mimicking nn.Linear's uniform(-1/sqrt(fan_in), ...).
    Weights are stored transposed (in, out) so y = x @ W + b == x @ W_pt.T + b."""
    keys = jax.random.split(key, 6)

    def linear(kw, kb, fan_in, fan_out):
        bound = 1.0 / jnp.sqrt(fan_in)
        w = jax.random.uniform(kw, (fan_in, fan_out), jnp.float32, -bound, bound)
        b = jax.random.uniform(kb, (1, fan_out), jnp.float32, -bound, bound)
        return w, b

    w1, b1 = linear(keys[0], keys[1], in_dim, hidden)
    w2, b2 = linear(keys[2], keys[3], hidden, hidden)
    w3, b3 = linear(keys[4], keys[5], hidden, out_dim)
    return (w1, b1, w2, b2, w3, b3)


def net_forward_ref_f32(x, params):
    """Pure-f32 reference (matches the PyTorch module's math)."""
    w1, b1, w2, b2, w3, b3 = params
    h1 = jnp.maximum(x @ w1 + b1, 0.0)
    h2 = jnp.maximum(h1 @ w2 + b2, 0.0)
    return h2 @ w3 + b3


def net_forward_ref_bf16(x, padded_params, out_dim, out_dtype=jnp.bfloat16):
    """Reference with the same bf16-operand / f32-accumulate / bf16-store math."""
    out = _mlp(x, *padded_params)
    return out[:, :out_dim].astype(out_dtype)


def ddqn_ref_bf16(s, s_next, actions, rewards, dones, pparams, ptparams,
                  out_dim, gamma):
    """Reference DDQN step using the same bf16/f32 arithmetic as the kernel."""
    q_s = _mlp(s, *pparams)[:, :out_dim]
    q_n_on = _mlp(s_next, *pparams)[:, :out_dim]
    q_n_tg = _mlp(s_next, *ptparams)[:, :out_dim]
    q_sa = jnp.take_along_axis(q_s, actions[:, None], axis=1)[:, 0]
    a_star = jnp.argmax(q_n_on, axis=1)
    q_next = jnp.take_along_axis(q_n_tg, a_star[:, None], axis=1)[:, 0]
    return q_sa, rewards + gamma * (1.0 - dones) * q_next


if __name__ == "__main__":
    # CartPole-like shapes: observation dim 4, 2 actions, hidden 32, batch 8.
    batch, in_dim, hidden, out_dim = 8, 4, 32, 2
    gamma = 0.99

    key = jax.random.PRNGKey(0)
    kx, kxn, kp, kt, ka, kr, kd = jax.random.split(key, 7)
    x = jax.random.normal(kx, (batch, in_dim), jnp.float32)
    x_next = jax.random.normal(kxn, (batch, in_dim), jnp.float32)
    actions = jax.random.randint(ka, (batch,), 0, out_dim, dtype=jnp.int32)
    rewards = jax.random.normal(kr, (batch,), jnp.float32)
    dones = (jax.random.uniform(kd, (batch,)) < 0.25).astype(jnp.float32)

    params = init_params(kp, in_dim, hidden, out_dim)    # online net (f32 master)
    tparams = init_params(kt, in_dim, hidden, out_dim)   # target net (f32 master)
    pparams, ptparams = pad_params(params), pad_params(tparams)

    # ---- Plain forward (the nn.Module spec) ----
    out_padded = jax.block_until_ready(net_forward_padded(x, pparams))
    out = net_forward(x, pparams, out_dim).astype(jnp.float32)
    assert out_padded.shape == (batch, 128)
    assert out.shape == (batch, out_dim)

    ref_bf16 = net_forward_ref_bf16(x, pparams, out_dim).astype(jnp.float32)
    ref_f32 = net_forward_ref_f32(x, params)
    # Tight check vs. the same bf16-MXU / f32-accum / bf16-store arithmetic.
    assert jnp.allclose(out, ref_bf16, atol=1e-2, rtol=1e-2)
    # Loose check vs. the pure-f32 PyTorch-equivalent math (bf16 rounding).
    assert jnp.allclose(out, ref_f32, atol=5e-2, rtol=5e-2)

    # ---- Fused double-DQN step: one pallas_call, narrow outputs ----
    q_sa_p, tgt_p = jax.block_until_ready(
        ddqn_fused_step(x, x_next, actions, rewards, dones, pparams, ptparams,
                        out_dim=out_dim, gamma=gamma))
    q_sa, tgt = q_sa_p[:batch, 0], tgt_p[:batch, 0]

    q_sa_ref, tgt_ref = ddqn_ref_bf16(x, x_next, actions, rewards, dones,
                                      pparams, ptparams, out_dim, gamma)
    assert jnp.allclose(q_sa, q_sa_ref, atol=1e-2, rtol=1e-2)
    assert jnp.allclose(tgt, tgt_ref, atol=1e-2, rtol=1e-2)
    # Loose f32 cross-check on Q(s,a) only (the target's argmax can legitimately
    # pick the other action at near-ties under bf16 weight quantization).
    q_sa_f32 = jnp.take_along_axis(net_forward_ref_f32(x, params),
                                   actions[:, None], axis=1)[:, 0]
    assert jnp.allclose(q_sa, q_sa_f32, atol=5e-2, rtol=5e-2)

    print("KERNEL_OK")
</pallas_src>

<mosaic_0001>
module attributes {stable_mosaic.version = 11 : i64} {
  func.func @mlp_kernel(%arg0: i32, %arg1: memref<8x4xf32, #tpu.memory_space<vmem>>, %arg2: memref<4x128xbf16, #tpu.memory_space<vmem>>, %arg3: memref<1x128xf32, #tpu.memory_space<vmem>>, %arg4: memref<128x128xbf16, #tpu.memory_space<vmem>>, %arg5: memref<1x128xf32, #tpu.memory_space<vmem>>, %arg6: memref<128x128xbf16, #tpu.memory_space<vmem>>, %arg7: memref<1x128xf32, #tpu.memory_space<vmem>>, %arg8: memref<8x128xbf16, #tpu.memory_space<vmem>>) attributes {dimension_semantics = [#tpu.dimension_semantics<parallel>], iteration_bounds = array<i64: 1>, scalar_prefetch = 0 : i64, scratch_operands = 0 : i64, tpu.core_type = #tpu.core_type<tc>, window_params = [{transform_indices = @transform_0, window_bounds = array<i64: 8, 4>}, {pipeline_mode = #tpu.pipeline_mode<synchronous>, transform_indices = @transform_1, window_bounds = array<i64: 4, 128>}, {pipeline_mode = #tpu.pipeline_mode<synchronous>, transform_indices = @transform_2, window_bounds = array<i64: 1, 128>}, {pipeline_mode = #tpu.pipeline_mode<synchronous>, transform_indices = @transform_3, window_bounds = array<i64: 128, 128>}, {pipeline_mode = #tpu.pipeline_mode<synchronous>, transform_indices = @transform_4, window_bounds = array<i64: 1, 128>}, {pipeline_mode = #tpu.pipeline_mode<synchronous>, transform_indices = @transform_5, window_bounds = array<i64: 128, 128>}, {pipeline_mode = #tpu.pipeline_mode<synchronous>, transform_indices = @transform_6, window_bounds = array<i64: 1, 128>}, {transform_indices = @transform_7, window_bounds = array<i64: 8, 128>}]} {
    %c0 = arith.constant 0 : index
    %c0_0 = arith.constant 0 : index
    %0 = vector.load %arg1[%c0, %c0_0] : memref<8x4xf32, #tpu.memory_space<vmem>>, vector<8x4xf32>
    %c0_1 = arith.constant 0 : index
    %c0_2 = arith.constant 0 : index
    %1 = vector.load %arg2[%c0_1, %c0_2] : memref<4x128xbf16, #tpu.memory_space<vmem>>, vector<4x128xbf16>
    %c0_3 = arith.constant 0 : index
    %c0_4 = arith.constant 0 : index
    %2 = vector.load %arg3[%c0_3, %c0_4] : memref<1x128xf32, #tpu.memory_space<vmem>>, vector<1x128xf32>
    %c0_5 = arith.constant 0 : index
    %c0_6 = arith.constant 0 : index
    %3 = vector.load %arg4[%c0_5, %c0_6] : memref<128x128xbf16, #tpu.memory_space<vmem>>, vector<128x128xbf16>
    %c0_7 = arith.constant 0 : index
    %c0_8 = arith.constant 0 : index
    %4 = vector.load %arg5[%c0_7, %c0_8] : memref<1x128xf32, #tpu.memory_space<vmem>>, vector<1x128xf32>
    %c0_9 = arith.constant 0 : index
    %c0_10 = arith.constant 0 : index
    %5 = vector.load %arg6[%c0_9, %c0_10] : memref<128x128xbf16, #tpu.memory_space<vmem>>, vector<128x128xbf16>
    %c0_11 = arith.constant 0 : index
    %c0_12 = arith.constant 0 : index
    %6 = vector.load %arg7[%c0_11, %c0_12] : memref<1x128xf32, #tpu.memory_space<vmem>>, vector<1x128xf32>
    %7 = arith.truncf %0 : vector<8x4xf32> to vector<8x4xbf16>
    %cst = arith.constant dense<0.000000e+00> : vector<8x128xf32>
    %8 = tpu.matmul %7, %1, %cst {dimension_numbers = #tpu.dot_dimension_numbers<[1], [0], [0], [1], [0, 0, 1, 1], [], []>} : vector<8x4xbf16>, vector<4x128xbf16>, vector<8x128xf32> -> vector<8x128xf32>
    %9 = vector.broadcast %2 : vector<1x128xf32> to vector<8x128xf32>
    %10 = arith.addf %8, %9 : vector<8x128xf32>
    %cst_13 = arith.constant 0.000000e+00 : f32
    %11 = vector.broadcast %cst_13 : f32 to vector<8x128xf32>
    %12 = arith.maximumf %10, %11 : vector<8x128xf32>
    %13 = arith.truncf %12 : vector<8x128xf32> to vector<8x128xbf16>
    %cst_14 = arith.constant dense<0.000000e+00> : vector<8x128xf32>
    %14 = tpu.matmul %13, %3, %cst_14 {dimension_numbers = #tpu.dot_dimension_numbers<[1], [0], [0], [1], [0, 0, 1, 1], [], []>} : vector<8x128xbf16>, vector<128x128xbf16>, vector<8x128xf32> -> vector<8x128xf32>
    %15 = vector.broadcast %4 : vector<1x128xf32> to vector<8x128xf32>
    %16 = arith.addf %14, %15 : vector<8x128xf32>
    %cst_15 = arith.constant 0.000000e+00 : f32
    %17 = vector.broadcast %cst_15 : f32 to vector<8x128xf32>
    %18 = arith.maximumf %16, %17 : vector<8x128xf32>
    %19 = arith.truncf %18 : vector<8x128xf32> to vector<8x128xbf16>
    %cst_16 = arith.constant dense<0.000000e+00> : vector<8x128xf32>
    %20 = tpu.matmul %19, %5, %cst_16 {dimension_numbers = #tpu.dot_dimension_numbers<[1], [0], [0], [1], [0, 0, 1, 1], [], []>} : vector<8x128xbf16>, vector<128x128xbf16>, vector<8x128xf32> -> vector<8x128xf32>
    %21 = vector.broadcast %6 : vector<1x128xf32> to vector<8x128xf32>
    %22 = arith.addf %20, %21 : vector<8x128xf32>
    %23 = arith.truncf %22 : vector<8x128xf32> to vector<8x128xbf16>
    %c0_17 = arith.constant 0 : index
    %c0_18 = arith.constant 0 : index
    %24 = vector.load %arg8[%c0_17, %c0_18] : memref<8x128xbf16, #tpu.memory_space<vmem>>, vector<8x128xbf16>
    tpu.vector_store %arg8[%c0_17, %c0_18], %23 {strides = array<i32>} : memref<8x128xbf16, #tpu.memory_space<vmem>>, vector<8x128xbf16>,
    return
  }
  func.func @transform_0(%arg0: i32) -> (i32, i32) {
    %c0_i32 = arith.constant 0 : i32
    %c0_i32_0 = arith.constant 0 : i32
    return %arg0, %c0_i32 : i32, i32
  }
  func.func @transform_1(%arg0: i32) -> (i32, i32) {
    %c0_i32 = arith.constant 0 : i32
    %c0_i32_0 = arith.constant 0 : i32
    %c0_i32_1 = arith.constant 0 : i32
    return %c0_i32, %c0_i32_0 : i32, i32
  }
  func.func @transform_2(%arg0: i32) -> (i32, i32) {
    %c0_i32 = arith.constant 0 : i32
    %c0_i32_0 = arith.constant 0 : i32
    %c0_i32_1 = arith.constant 0 : i32
    return %c0_i32, %c0_i32_0 : i32, i32
  }
  func.func @transform_3(%arg0: i32) -> (i32, i32) {
    %c0_i32 = arith.constant 0 : i32
    %c0_i32_0 = arith.constant 0 : i32
    %c0_i32_1 = arith.constant 0 : i32
    return %c0_i32, %c0_i32_0 : i32, i32
  }
  func.func @transform_4(%arg0: i32) -> (i32, i32) {
    %c0_i32 = arith.constant 0 : i32
    %c0_i32_0 = arith.constant 0 : i32
    %c0_i32_1 = arith.constant 0 : i32
    return %c0_i32, %c0_i32_0 : i32, i32
  }
  func.func @transform_5(%arg0: i32) -> (i32, i32) {
    %c0_i32 = arith.constant 0 : i32
    %c0_i32_0 = arith.constant 0 : i32
    %c0_i32_1 = arith.constant 0 : i32
    return %c0_i32, %c0_i32_0 : i32, i32
  }
  func.func @transform_6(%arg0: i32) -> (i32, i32) {
    %c0_i32 = arith.constant 0 : i32
    %c0_i32_0 = arith.constant 0 : i32
    %c0_i32_1 = arith.constant 0 : i32
    return %c0_i32, %c0_i32_0 : i32, i32
  }
  func.func @transform_7(%arg0: i32) -> (i32, i32) {
    %c0_i32 = arith.constant 0 : i32
    %c0_i32_0 = arith.constant 0 : i32
    return %arg0, %c0_i32 : i32, i32
  }
}

</mosaic_0001>

<bundles_post_ra>
// kernel: net_forward_padded.1
= control target key start
LH: loop header
LB: loop body
LE: loop exit
PB: predicated region body
PF: predicated region fallthrough
CT: control target
= control target key end

     0   :  { %12 = vsyncpa [#allocation3], 0  ;;  %s660_s0 = inlined_call_operand.vmem [shape: f32[8,4], index: 0, kind: input, shape index: {}]   ;;  %s661_s1 = inlined_call_operand.vmem [shape: bf16[4,128], index: 1, kind: input, shape index: {}]   ;;  %s662_s2 = inlined_call_operand.vmem [shape: f32[1,128], index: 2, kind: input, shape index: {}]   ;;  %s663_s3 = inlined_call_operand.hbm [shape: bf16[128,128], index: 3, kind: input, shape index: {}]   ;;  %s664_s4 = inlined_call_operand.vmem [shape: f32[1,128], index: 4, kind: input, shape index: {}]   ;;  %s665_s5 = inlined_call_operand.hbm [shape: bf16[128,128], index: 5, kind: input, shape index: {}]   ;;  %s666_s6 = inlined_call_operand.vmem [shape: f32[1,128], index: 6, kind: input, shape index: {}]   ;;  %s667_s7 = inlined_call_operand.hbm [shape: bf16[8,128], index: 7, kind: output, shape index: {}]  }
   0x1   :  { %13 = vsyncpa [#allocation6], 0 }
   0x2   :  { %14 = vsyncpa [#allocation4], 0  ;;  %s539_s24 = smov [#allocation2]   ;;  %s467_s28 = scalar_lea.hbm %s663_s3, 1024 }
   0x3   :  { %s26_s25 = sshll.u32 %s539_s24, 4  ;;  %p468_p0 = scmp.ne.s32.totalorder %s663_s3, %s467_s28  ;;  %s27_s25 = int_to_ptr.vmem [resolvable:$true] %s26_s25 }
   0x4   :  { %p471_p1 = scmp.lt.u32.totalorder %s467_s28, %s663_s3 }
   0x6   :  { %p473_p2 = pnand %p471_p1, %p468_p0 }
   0x8   :  { %476 = shalt.err (!%p473_p2)
}
   0x9   :  { %s477_s10 = scalar_lea.vmem %s27_s25, 1024  ;;  %p482_p4 = scmp.lt.s32.totalorder %s27_s25, %s27_s25 }
   0xa   :  { %p478_p3 = scmp.ne.s32.totalorder %s27_s25, %s477_s10  ;;  %p483_p5 = scmp.lt.s32.totalorder %s477_s10, %s477_s10 }
   0xc   :  { %p484_p6 = por %p483_p5, %p482_p4 }
   0xe   :  { %p485_p7 = pnand %p484_p6, %p478_p3 }
  0x10   :  { %488 = shalt.err (!%p485_p7)
}
  0x11   :  { %s540_s11 = smov 64   ;;  %s541_s12 = smov 4  }
  0x12   :  { %32 = dma.hbm_to_vmem [thread:$0]  %s663_s3, 1024, %s27_s25, [#allocation3], %s540_s11, %s540_s11, %s541_s12  }
  0x13   :  { %s542_s15 = smov [#allocation5]   ;;  %s489_s19 = scalar_lea.hbm %s665_s5, 1024 }
  0x14   :  { %s40_s16 = sshll.u32 %s542_s15, 4  ;;  %p490_p8 = scmp.ne.s32.totalorder %s665_s5, %s489_s19  ;;  %s41_s16 = int_to_ptr.vmem [resolvable:$true] %s40_s16 }
  0x15   :  { %p493_p9 = scmp.lt.u32.totalorder %s489_s19, %s665_s5 }
  0x17   :  { %p495_p10 = pnand %p493_p9, %p490_p8 }
  0x19   :  { %498 = shalt.err (!%p495_p10)
}
  0x1a   :  { %s499_s24 = scalar_lea.vmem %s41_s16, 1024  ;;  %p504_p12 = scmp.lt.s32.totalorder %s41_s16, %s41_s16 }
  0x1b   :  { %p500_p11 = scmp.ne.s32.totalorder %s41_s16, %s499_s24  ;;  %p505_p13 = scmp.lt.s32.totalorder %s499_s24, %s499_s24 }
  0x1d   :  { %p506_p0 = por %p505_p13, %p504_p12 }
  0x1f   :  { %p507_p1 = pnand %p506_p0, %p500_p11 }
  0x21   :  { %510 = shalt.err (!%p507_p1)
}
  0x22   :  { %46 = dma.hbm_to_vmem [thread:$0]  %s665_s5, 1024, %s41_s16, [#allocation6], %s540_s11, %s540_s11, %s541_s12  }
  0x23   :  { %533 = dma.done.wait [#allocation3], 1024  }
  0x24   :  { %534 = vsyncadd [#allocation3], 4294966272 }
  0x25   :  { %535 = dma.done.wait [#allocation6], 1024  }
  0x26   :  { %536 = vsyncadd [#allocation6], 4294966272  ;;  %v543_v0 = vmov 0.0   ;;  %vm544_vm0 = vmmov 0   ;;  %vm104_vm1 = vcmask 1041408   ;;  %v56_v2 = vld [vmem:[%s660_s0] sm:$0xff] }
  0x27   :  { %398 = vmatprep.subr.bf16.mxu0 %v543_v0  ;;  %400 = vmatprep.mubr.msk.bf16.mxu0 %vm544_vm0, %v543_v0  ;;  %v57_v1 = vld [vmem:[%s661_s1] sm:$0x3]  ;;  %v93_v4 = vpack.c.bf16 %v56_v2, %v56_v2  ;;  %vm100_vm2 = vcmask 31744   ;;  %v452_v6 = vld [vmem:[#allocation2 + $0x8] sm:$0xff]   ;;  %v453_v7 = vld [vmem:[#allocation2 + $0x10] sm:$0xff]   ;;  %s545_s9 = smov [#allocation7]  }
  0x28   :  { %404 = vmatprep.subr.bf16.mxu1 %v543_v0  ;;  %420 = vmatprep.mubr.msk.bf16.mxu1 %vm544_vm0, %v543_v0  ;;  %v106_v3 = vsel %vm104_vm1, %v57_v1, 0  ;;  %v451_v5 = vld [vmem:[#allocation2] sm:$0xff]   ;;  %v454_v8 = vld [vmem:[#allocation2 + $0x18] sm:$0xff]   ;;  %v456_v10 = vld [vmem:[#allocation2 + $0x28] sm:$0xff]   ;;  %s348_s10 = sshll.u32 %s545_s9, 4  ;;  %s349_s10 = int_to_ptr.vmem [resolvable:$true] %s348_s10 }
  0x29   :  { %399 = vmatpush3.bf16.msra.mxu0 %v106_v3  ;;  %405 = vmatpush3.bf16.msra.mxu1 %v451_v5  ;;  %v455_v9 = vld [vmem:[#allocation2 + $0x20] sm:$0xff]   ;;  %v457_v11 = vld [vmem:[#allocation2 + $0x30] sm:$0xff]   ;;  %v458_v12 = vld [vmem:[#allocation2 + $0x38] sm:$0xff]   ;;  %p516_p3 = scmp.lt.s32.totalorder %s349_s10, %s349_s10 }
  0x2a   :  { %424 = vmatprep.subr.bf16.mxu0 %v543_v0  ;;  %406 = vmatprep.subr.bf16.mxu1 %v543_v0  ;;  %v459_v13 = vld [vmem:[#allocation5] sm:$0xff]   ;;  %v460_v14 = vld [vmem:[#allocation5 + $0x8] sm:$0xff]   ;;  %v461_v15 = vld [vmem:[#allocation5 + $0x10] sm:$0xff]  }
  0x2b   :  { %v462_v16 = vld [vmem:[#allocation5 + $0x18] sm:$0xff]   ;;  %v463_v17 = vld [vmem:[#allocation5 + $0x20] sm:$0xff]   ;;  %v464_v18 = vld [vmem:[#allocation5 + $0x28] sm:$0xff]  }
  0x2c   :  { %401 = vmatmul.mubr.msk.bf16.vlgmr.msra.gmra.mrb[0].mxu0 %vm100_vm2, %v93_v4  ;;  %v358_v19 = vld [vmem:[%s662_s2] ss:$0 sm:$0xff]  ;;  %v465_v27 = vld [vmem:[#allocation5 + $0x30] sm:$0xff]   ;;  %v466_v28 = vld [vmem:[#allocation5 + $0x38] sm:$0xff]  }
  0x2d   :  { %440 = vmatprep.mubr.msk.bf16.mxu0 %vm544_vm0, %v543_v0  ;;  %407 = vmatpush3.bf16.msra.mxu1 %v452_v6  ;;  %v360_v29 = vld [vmem:[%s664_s4] ss:$0 sm:$0xff]  ;;  %s511_s4 = scalar_lea.vmem %s349_s10, 64 }
  0x2e   :  { %408 = vmatprep.subr.bf16.mxu1 %v543_v0  ;;  %425 = vmatpush3.bf16.msra.mxu0 %v459_v13  ;;  %v369_v37 = vld [vmem:[%s666_s6] ss:$0 sm:$0xff]  ;;  %p512_p2 = scmp.ne.s32.totalorder %s349_s10, %s511_s4  ;;  %p517_p4 = scmp.lt.s32.totalorder %s511_s4, %s511_s4 }
  0x2f   :  { %426 = vmatprep.subr.bf16.mxu0 %v543_v0 }
  0x30   :  { %p518_p5 = por %p517_p4, %p516_p3 }
  0x31   :  { %409 = vmatpush3.bf16.msra.mxu1 %v453_v7 }
  0x32   :  { %410 = vmatprep.subr.bf16.mxu1 %v543_v0  ;;  %427 = vmatpush3.bf16.msra.mxu0 %v460_v14  ;;  %p519_p6 = pnand %p518_p5, %p512_p2 }
  0x33   :  { %428 = vmatprep.subr.bf16.mxu0 %v543_v0 }
  0x35   :  { %411 = vmatpush3.bf16.msra.mxu1 %v454_v8 }
  0x36   :  { %412 = vmatprep.subr.bf16.mxu1 %v543_v0  ;;  %429 = vmatpush3.bf16.msra.mxu0 %v461_v15 }
  0x37   :  { %430 = vmatprep.subr.bf16.mxu0 %v543_v0 }
  0x39   :  { %413 = vmatpush3.bf16.msra.mxu1 %v455_v9 }
  0x3a   :  { %414 = vmatprep.subr.bf16.mxu1 %v543_v0  ;;  %431 = vmatpush3.bf16.msra.mxu0 %v462_v16 }
  0x3b   :  { %432 = vmatprep.subr.bf16.mxu0 %v543_v0 }
  0x3d   :  { %415 = vmatpush3.bf16.msra.mxu1 %v456_v10 }
  0x3e   :  { %416 = vmatprep.subr.bf16.mxu1 %v543_v0  ;;  %433 = vmatpush3.bf16.msra.mxu0 %v463_v17 }
  0x3f   :  { %434 = vmatprep.subr.bf16.mxu0 %v543_v0 }
  0x41   :  { %417 = vmatpush3.bf16.msra.mxu1 %v457_v11 }
  0x42   :  { %418 = vmatprep.subr.bf16.mxu1 %v543_v0  ;;  %435 = vmatpush3.bf16.msra.mxu0 %v464_v18 }
  0x43   :  { %436 = vmatprep.subr.bf16.mxu0 %v543_v0 }
  0x45   :  { %419 = vmatpush3.bf16.msra.mxu1 %v458_v12 }
  0x46   :  { %437 = vmatpush3.bf16.msra.mxu0 %v465_v27 }
  0x47   :  { %438 = vmatprep.subr.bf16.mxu0 %v543_v0 }
  0x4a   :  { %439 = vmatpush3.bf16.msra.mxu0 %v466_v28 }
  0xff   :  { %v142_v20 = vpop.f32.mrb[0].mxu0 }
 0x100   :  { %v143_v21 = vadd.f32 %v358_v19, %v142_v20  ;;  %v402_v22 = vpop.f32.mrb[1].mxu0 }
 0x101   :  { %v145_v23 = vpop.f32.mrb[2].mxu0 }
 0x102   :  { %v148_v24 = vmax.f32 %v143_v21, 0.0  ;;  %v403_v25 = vpop.f32.mrb[3].mxu0 }
 0x104   :  { %v149_v26 = vpack.c.bf16 %v148_v24, %v148_v24 }
 0x106   :  { %421 = vmatmul.mubr.bf16.vlgmr.msra.gmra.mrb[0].mxu1 %v149_v26 }
 0x1d9   :  { %v238_v30 = vpop.f32.mrb[0].mxu1 }
 0x1da   :  { %v239_v31 = vadd.f32 %v360_v29, %v238_v30  ;;  %v422_v32 = vpop.f32.mrb[1].mxu1 }
 0x1db   :  { %v241_v33 = vpop.f32.mrb[2].mxu1 }
 0x1dc   :  { %v244_v34 = vmax.f32 %v239_v31, 0.0  ;;  %v423_v35 = vpop.f32.mrb[3].mxu1 }
 0x1de   :  { %v245_v36 = vpack.c.bf16 %v244_v34, %v244_v34 }
 0x1e0   :  { %441 = vmatmul.mubr.bf16.vlgmr.msra.gmra.mrb[4].mxu0 %v245_v36 }
 0x2b3   :  { %v334_v38 = vpop.f32.mrb[4].mxu0 }
 0x2b4   :  { %v335_v39 = vadd.f32 %v369_v37, %v334_v38  ;;  %v442_v40 = vpop.f32.mrb[5].mxu0 }
 0x2b5   :  { %v337_v41 = vpop.f32.mrb[6].mxu0 }
 0x2b6   :  { %v340_v42 = vpack.c.bf16 %v335_v39, %v335_v39  ;;  %v443_v43 = vpop.f32.mrb[7].mxu0 }
 0x2b8   :  { %341 = vst [vmem:[#allocation7] sm:$0xf] %v340_v42 }
 0x2b9   :  { %522 = shalt.err (!%p519_p6)
}
 0x2ba   :  { %s523_s6 = scalar_lea.hbm %s667_s7, 64 }
 0x2bb   :  { %p524_p7 = scmp.ne.s32.totalorder %s667_s7, %s523_s6  ;;  %p527_p8 = scmp.lt.u32.totalorder %s523_s6, %s667_s7 }
 0x2bd   :  { %p529_p9 = pnand %p527_p8, %p524_p7 }
 0x2bf   :  { %532 = shalt.err (!%p529_p9)
}
 0x2c0   :  { %351 = dma.vmem_to_hbm [thread:$0]  %s349_s10, 64, %s667_s7, [#allocation4]  }
 0x2c1   :  { %537 = dma.done.wait [#allocation4], 64  }
 0x2c2   :  { %538 = vsyncadd [#allocation4], 4294967232 }
 0x2c3   :  { %355 = vsyncpa [#allocation3], 1 }
 0x2c4   :  { %356 = vsyncpa [#allocation6], 1 }
 0x2c5   :  { %357 = vsyncpa [#allocation4], 1 }

</bundles_post_ra>
